<compile_context>
chip_gen: v5e
topology: v5e:2x2
jax: 0.10.0
libtpu: 0.0.40
codegen_flags: <defaults>
</compile_context>

<pallas_src>
import jax
import jax.numpy as jnp
from jax.experimental import pallas as pl
from jax.experimental.pallas import tpu as pltpu


def _leaky(v):
    # LeakyReLU(0.2) == max(v, 0.2*v) for slope < 1.
    return jnp.maximum(v, 0.2 * v)


def _pixel_attention_kernel(
    b2_ref,       # SMEM (1,)            conv2 bias (scalar)
    patches_ref,  # VMEM (Bb, C*9, HW)   im2col patches of zero-padded x
    xf_ref,       # VMEM (Bb, C*HW)      x flattened in torch .view order
    w1m_ref,      # VMEM (HC, C*9)       conv1 weight as a matrix
    b1_ref,       # VMEM (HC, 1)         conv1 bias
    w2_ref,       # VMEM (HC, 1)         conv2 (1x1) weight
    W1_ref,       # VMEM (C*HW, HL)      lin1 weight (pre-transposed)
    bl1_ref,      # VMEM (1, HL)         lin1 bias
    W2_ref,       # VMEM (HL, HW)        lin2 weight (pre-transposed)
    bl2_ref,      # VMEM (1, HW)         lin2 bias
    y_ref,        # out  (Bb, C*HW)      x * a  (flattened)
    a_ref,        # out  (Bb, HW)        a      (flattened)
):
    Bb, HW = a_ref.shape
    C = xf_ref.shape[1] // HW

    xf = xf_ref[...]                              # (Bb, C*HW)
    w1m = w1m_ref[...]                            # (HC, C*9)
    b1 = b1_ref[...]                              # (HC, 1)
    w2 = w2_ref[...]                              # (HC, 1)
    b2 = b2_ref[0]                                # scalar from SMEM

    # ---- linear path: two lane-dense MXU matmuls over all Bb rows at once ----
    # (no residual: in_features != out_features for both LinearUnits here)
    z1 = _leaky(jnp.dot(xf, W1_ref[...], preferred_element_type=jnp.float32)
                + bl1_ref[...])                                          # (Bb, HL)
    al = _leaky(jnp.dot(z1, W2_ref[...], preferred_element_type=jnp.float32)
                + bl2_ref[...])                                          # (Bb, HW)

    # ---- conv path (statically unrolled over the small batch block) ----
    rows = []
    for i in range(Bb):
        p_i = patches_ref[i]                      # (C*9, HW), lane-dense
        h1 = _leaky(jnp.dot(w1m, p_i, preferred_element_type=jnp.float32) + b1)  # (HC, HW)
        # 1x1 conv HC -> 1: VPU multiply + sublane reduce (not a thin MXU matvec)
        s_i = _leaky(jnp.sum(h1 * w2, axis=0, keepdims=True) + b2)               # (1, HW)
        rows.append(s_i)
    s = jnp.concatenate(rows, axis=0) if Bb > 1 else rows[0]             # (Bb, HW)

    # ---- combine, sigmoid, gate ----
    logits = s + al
    a = 1.0 / (1.0 + jnp.exp(-logits))            # sigmoid; exp runs on the EUP
    a_ref[...] = a.astype(a_ref.dtype)
    # y[b, c*HW + p] = x[b, c*HW + p] * a[b, p]  -> repeat a C times along lanes.
    a_rep = jnp.concatenate([a] * C, axis=-1)     # (Bb, C*HW)
    y_ref[...] = (xf * a_rep).astype(y_ref.dtype)


def pixel_attention_forward(x, conv1_w, conv1_b, conv2_w, conv2_b,
                            lin1_w, lin1_b, lin2_w, lin2_b, *, block_b=8):
    """x: (B, C, H, W). Weights in torch layouts: conv (O,I,kh,kw), linear (out,in).
    Returns (x * a, a) with shapes ((B,C,H,W), (B,1,H,W))."""
    B, C, H, W = x.shape
    HW = H * W
    HC = conv1_w.shape[0]
    HL = lin1_w.shape[0]

    # LinearUnit only adds a residual when in_features == out_features; with
    # these hyperparameters it never triggers (kept out of the kernel).
    assert C * HW != HL and HL != HW, "residual LinearUnit config not supported"

    # ---- wrapper-side layout plumbing (pure XLA, no compute hoisted) ----
    xpad = jnp.pad(x, ((0, 0), (0, 0), (1, 1), (1, 1)))
    taps = jnp.stack([xpad[:, :, kh:kh + H, kw:kw + W]
                      for kh in range(3) for kw in range(3)], axis=2)    # (B,C,9,H,W)
    patches = taps.reshape(B, C * 9, HW)                                  # (B, C*9, HW)
    xf = x.reshape(B, C * HW)

    w1m = conv1_w.reshape(HC, C * 9)
    b1c = conv1_b.reshape(HC, 1)
    w2c = conv2_w.reshape(HC, 1)
    b2s = conv2_b.reshape(1)
    W1t = lin1_w.T                        # (C*HW, HL)
    bl1 = lin1_b.reshape(1, HL)
    W2t = lin2_w.T                        # (HL, HW)
    bl2 = lin2_b.reshape(1, HW)

    Bb = min(B, block_b)
    assert B % Bb == 0, "batch must be divisible by the per-step batch block"
    grid = (B // Bb,)

    flops = int(2 * B * HW * (C * 9) * HC + 2 * B * HW * HC
                + 2 * B * (C * HW) * HL + 2 * B * HL * HW
                + 10 * B * HW + 2 * B * C * HW)
    bytes_accessed = int(4 * (patches.size + xf.size + w1m.size + b1c.size
                              + w2c.size + b2s.size + W1t.size + bl1.size
                              + W2t.size + bl2.size + B * C * HW + B * HW))
    cost = pl.CostEstimate(flops=flops, transcendentals=int(B * HW),
                           bytes_accessed=bytes_accessed)

    y_flat, a_flat = pl.pallas_call(
        _pixel_attention_kernel,
        out_shape=(jax.ShapeDtypeStruct((B, C * HW), x.dtype),
                   jax.ShapeDtypeStruct((B, HW), x.dtype)),
        grid_spec=pltpu.PrefetchScalarGridSpec(
            num_scalar_prefetch=0,
            grid=grid,
            in_specs=[
                pl.BlockSpec(memory_space=pltpu.MemorySpace.SMEM),   # conv2 bias scalar
                pl.BlockSpec((Bb, C * 9, HW), lambda i: (i, 0, 0)),  # patches
                pl.BlockSpec((Bb, C * HW), lambda i: (i, 0)),        # x flat
                pl.BlockSpec((HC, C * 9), lambda i: (0, 0)),         # conv1 W (resident)
                pl.BlockSpec((HC, 1), lambda i: (0, 0)),             # conv1 b
                pl.BlockSpec((HC, 1), lambda i: (0, 0)),             # conv2 W
                pl.BlockSpec((C * HW, HL), lambda i: (0, 0)),        # lin1 W (resident)
                pl.BlockSpec((1, HL), lambda i: (0, 0)),             # lin1 b
                pl.BlockSpec((HL, HW), lambda i: (0, 0)),            # lin2 W (resident)
                pl.BlockSpec((1, HW), lambda i: (0, 0)),             # lin2 b
            ],
            out_specs=[
                pl.BlockSpec((Bb, C * HW), lambda i: (i, 0)),        # x * a (lane-dense)
                pl.BlockSpec((Bb, HW), lambda i: (i, 0)),            # a     (lane-dense)
            ],
        ),
        compiler_params=pltpu.CompilerParams(
            dimension_semantics=("parallel",),
        ),
        cost_estimate=cost,
    )(b2s, patches, xf, w1m, b1c, w2c, W1t, bl1, W2t, bl2)

    return y_flat.reshape(B, C, H, W), a_flat.reshape(B, 1, H, W)


def pixel_attention_reference(x, conv1_w, conv1_b, conv2_w, conv2_b,
                              lin1_w, lin1_b, lin2_w, lin2_b):
    """Pure-JAX reference mirroring the PyTorch module."""
    B, C, H, W = x.shape
    lrelu = lambda v: jnp.where(v >= 0, v, 0.2 * v)
    dn = ('NCHW', 'OIHW', 'NCHW')
    a = jax.lax.conv_general_dilated(x, conv1_w, (1, 1), ((1, 1), (1, 1)),
                                     dimension_numbers=dn)
    a = lrelu(a + conv1_b.reshape(1, -1, 1, 1))
    a = jax.lax.conv_general_dilated(a, conv2_w, (1, 1), 'VALID',
                                     dimension_numbers=dn)
    a = lrelu(a + conv2_b.reshape(1, -1, 1, 1))
    xf = x.reshape(B, C * H * W)
    z = lrelu(xf @ lin1_w.T + lin1_b)
    al = lrelu(z @ lin2_w.T + lin2_b)
    att = jax.nn.sigmoid(a.reshape(B, H * W) + al).reshape(B, 1, H, W)
    return x * att, att


if __name__ == "__main__":
    # pixel_attention(in_channels=4, in_side=16, hidden_channels=8, hidden_linear=32)
    B, C, H, W = 2, 4, 16, 16
    HC, HL = 8, 32

    key = jax.random.PRNGKey(0)
    ks = jax.random.split(key, 9)

    def uinit(k, shape, fan_in):
        bound = 1.0 / (fan_in ** 0.5)
        return jax.random.uniform(k, shape, jnp.float32, -bound, bound)

    x = jax.random.normal(ks[0], (B, C, H, W), dtype=jnp.float32)
    conv1_w = uinit(ks[1], (HC, C, 3, 3), C * 9)
    conv1_b = uinit(ks[2], (HC,), C * 9)
    conv2_w = uinit(ks[3], (1, HC, 1, 1), HC)
    conv2_b = uinit(ks[4], (1,), HC)
    lin1_w = uinit(ks[5], (HL, C * H * W), C * H * W)
    lin1_b = uinit(ks[6], (HL,), C * H * W)
    lin2_w = uinit(ks[7], (H * W, HL), HL)
    lin2_b = uinit(ks[8], (H * W,), HL)

    params = (conv1_w, conv1_b, conv2_w, conv2_b, lin1_w, lin1_b, lin2_w, lin2_b)

    y, a = jax.jit(pixel_attention_forward)(x, *params)
    y = jax.block_until_ready(y)
    a = jax.block_until_ready(a)

    y_exp, a_exp = pixel_attention_reference(x, *params)

    assert y.shape == (B, C, H, W) and a.shape == (B, 1, H, W), (y.shape, a.shape)
    assert jnp.allclose(a, a_exp, atol=1e-4, rtol=1e-4), "attention map mismatch"
    assert jnp.allclose(y, y_exp, atol=1e-4, rtol=1e-4), "gated output mismatch"

    print("KERNEL_OK")
</pallas_src>

<mosaic_0001>
module attributes {stable_mosaic.version = 11 : i64} {
  func.func @_pixel_attention_kernel(%arg0: i32, %arg1: memref<1xf32, #tpu.memory_space<smem>>, %arg2: memref<2x36x256xf32, #tpu.memory_space<vmem>>, %arg3: memref<2x1024xf32, #tpu.memory_space<vmem>>, %arg4: memref<8x36xf32, #tpu.memory_space<vmem>>, %arg5: memref<8x1xf32, #tpu.memory_space<vmem>>, %arg6: memref<8x1xf32, #tpu.memory_space<vmem>>, %arg7: memref<1024x32xf32, #tpu.memory_space<vmem>>, %arg8: memref<1x32xf32, #tpu.memory_space<vmem>>, %arg9: memref<32x256xf32, #tpu.memory_space<vmem>>, %arg10: memref<1x256xf32, #tpu.memory_space<vmem>>, %arg11: memref<2x1024xf32, #tpu.memory_space<vmem>>, %arg12: memref<2x256xf32, #tpu.memory_space<vmem>>) attributes {dimension_semantics = [#tpu.dimension_semantics<parallel>], iteration_bounds = array<i64: 1>, scalar_prefetch = 0 : i64, scratch_operands = 0 : i64, tpu.core_type = #tpu.core_type<tc>, window_params = [{transform_indices = @transform_0, window_bounds = array<i64: 1>}, {transform_indices = @transform_1, window_bounds = array<i64: 2, 36, 256>}, {transform_indices = @transform_2, window_bounds = array<i64: 2, 1024>}, {pipeline_mode = #tpu.pipeline_mode<synchronous>, transform_indices = @transform_3, window_bounds = array<i64: 8, 36>}, {pipeline_mode = #tpu.pipeline_mode<synchronous>, transform_indices = @transform_4, window_bounds = array<i64: 8, 1>}, {pipeline_mode = #tpu.pipeline_mode<synchronous>, transform_indices = @transform_5, window_bounds = array<i64: 8, 1>}, {pipeline_mode = #tpu.pipeline_mode<synchronous>, transform_indices = @transform_6, window_bounds = array<i64: 1024, 32>}, {pipeline_mode = #tpu.pipeline_mode<synchronous>, transform_indices = @transform_7, window_bounds = array<i64: 1, 32>}, {pipeline_mode = #tpu.pipeline_mode<synchronous>, transform_indices = @transform_8, window_bounds = array<i64: 32, 256>}, {pipeline_mode = #tpu.pipeline_mode<synchronous>, transform_indices = @transform_9, window_bounds = array<i64: 1, 256>}, {transform_indices = @transform_10, window_bounds = array<i64: 2, 1024>}, {transform_indices = @transform_11, window_bounds = array<i64: 2, 256>}]} {
    %c0 = arith.constant 0 : index
    %c0_0 = arith.constant 0 : index
    %0 = vector.load %arg3[%c0, %c0_0] : memref<2x1024xf32, #tpu.memory_space<vmem>>, vector<2x1024xf32>
    %c0_1 = arith.constant 0 : index
    %c0_2 = arith.constant 0 : index
    %1 = vector.load %arg4[%c0_1, %c0_2] : memref<8x36xf32, #tpu.memory_space<vmem>>, vector<8x36xf32>
    %c0_3 = arith.constant 0 : index
    %c0_4 = arith.constant 0 : index
    %2 = vector.load %arg5[%c0_3, %c0_4] : memref<8x1xf32, #tpu.memory_space<vmem>>, vector<8x1xf32>
    %c0_5 = arith.constant 0 : index
    %c0_6 = arith.constant 0 : index
    %3 = vector.load %arg6[%c0_5, %c0_6] : memref<8x1xf32, #tpu.memory_space<vmem>>, vector<8x1xf32>
    %c0_7 = arith.constant 0 : index
    %4 = memref.load %arg1[%c0_7] : memref<1xf32, #tpu.memory_space<smem>>
    %c0_8 = arith.constant 0 : index
    %c0_9 = arith.constant 0 : index
    %5 = vector.load %arg7[%c0_8, %c0_9] : memref<1024x32xf32, #tpu.memory_space<vmem>>, vector<1024x32xf32>
    %cst = arith.constant dense<0.000000e+00> : vector<2x32xf32>
    %6 = tpu.matmul %0, %5, %cst {dimension_numbers = #tpu.dot_dimension_numbers<[1], [0], [0], [1], [0, 0, 1, 1], [], []>} : vector<2x1024xf32>, vector<1024x32xf32>, vector<2x32xf32> -> vector<2x32xf32>
    %c0_10 = arith.constant 0 : index
    %c0_11 = arith.constant 0 : index
    %7 = vector.load %arg8[%c0_10, %c0_11] : memref<1x32xf32, #tpu.memory_space<vmem>>, vector<1x32xf32>
    %8 = vector.broadcast %7 : vector<1x32xf32> to vector<2x32xf32>
    %9 = arith.addf %6, %8 : vector<2x32xf32>
    %cst_12 = arith.constant 2.000000e-01 : f32
    %10 = vector.broadcast %cst_12 : f32 to vector<2x32xf32>
    %11 = arith.mulf %10, %9 : vector<2x32xf32>
    %12 = arith.maximumf %9, %11 : vector<2x32xf32>
    %c0_13 = arith.constant 0 : index
    %c0_14 = arith.constant 0 : index
    %13 = vector.load %arg9[%c0_13, %c0_14] : memref<32x256xf32, #tpu.memory_space<vmem>>, vector<32x256xf32>
    %cst_15 = arith.constant dense<0.000000e+00> : vector<2x256xf32>
    %14 = tpu.matmul %12, %13, %cst_15 {dimension_numbers = #tpu.dot_dimension_numbers<[1], [0], [0], [1], [0, 0, 1, 1], [], []>} : vector<2x32xf32>, vector<32x256xf32>, vector<2x256xf32> -> vector<2x256xf32>
    %c0_16 = arith.constant 0 : index
    %c0_17 = arith.constant 0 : index
    %15 = vector.load %arg10[%c0_16, %c0_17] : memref<1x256xf32, #tpu.memory_space<vmem>>, vector<1x256xf32>
    %16 = vector.broadcast %15 : vector<1x256xf32> to vector<2x256xf32>
    %17 = arith.addf %14, %16 : vector<2x256xf32>
    %cst_18 = arith.constant 2.000000e-01 : f32
    %18 = vector.broadcast %cst_18 : f32 to vector<2x256xf32>
    %19 = arith.mulf %18, %17 : vector<2x256xf32>
    %20 = arith.maximumf %17, %19 : vector<2x256xf32>
    %c0_19 = arith.constant 0 : index
    %c0_20 = arith.constant 0 : index
    %c0_21 = arith.constant 0 : index
    %21 = vector.load %arg2[%c0_19, %c0_20, %c0_21] : memref<2x36x256xf32, #tpu.memory_space<vmem>>, vector<1x36x256xf32>
    %22 = vector.shape_cast %21 : vector<1x36x256xf32> to vector<36x256xf32>
    %cst_22 = arith.constant dense<0.000000e+00> : vector<8x256xf32>
    %23 = tpu.matmul %1, %22, %cst_22 {dimension_numbers = #tpu.dot_dimension_numbers<[1], [0], [0], [1], [0, 0, 1, 1], [], []>} : vector<8x36xf32>, vector<36x256xf32>, vector<8x256xf32> -> vector<8x256xf32>
    %24 = vector.broadcast %2 : vector<8x1xf32> to vector<8x256xf32>
    %25 = arith.addf %23, %24 : vector<8x256xf32>
    %cst_23 = arith.constant 2.000000e-01 : f32
    %26 = vector.broadcast %cst_23 : f32 to vector<8x256xf32>
    %27 = arith.mulf %26, %25 : vector<8x256xf32>
    %28 = arith.maximumf %25, %27 : vector<8x256xf32>
    %29 = vector.broadcast %3 : vector<8x1xf32> to vector<8x256xf32>
    %30 = arith.mulf %28, %29 : vector<8x256xf32>
    %cst_24 = arith.constant dense<0.000000e+00> : vector<256xf32>
    %31 = vector.multi_reduction <add>, %30, %cst_24 [0] : vector<8x256xf32> to vector<256xf32>
    %32 = vector.shape_cast %31 : vector<256xf32> to vector<1x256xf32>
    %33 = vector.broadcast %4 : f32 to vector<1x256xf32>
    %34 = arith.addf %32, %33 : vector<1x256xf32>
    %cst_25 = arith.constant 2.000000e-01 : f32
    %35 = vector.broadcast %cst_25 : f32 to vector<1x256xf32>
    %36 = arith.mulf %35, %34 : vector<1x256xf32>
    %37 = arith.maximumf %34, %36 : vector<1x256xf32>
    %c1 = arith.constant 1 : index
    %c0_26 = arith.constant 0 : index
    %c0_27 = arith.constant 0 : index
    %38 = vector.load %arg2[%c1, %c0_26, %c0_27] : memref<2x36x256xf32, #tpu.memory_space<vmem>>, vector<1x36x256xf32>
    %39 = vector.shape_cast %38 : vector<1x36x256xf32> to vector<36x256xf32>
    %cst_28 = arith.constant dense<0.000000e+00> : vector<8x256xf32>
    %40 = tpu.matmul %1, %39, %cst_28 {dimension_numbers = #tpu.dot_dimension_numbers<[1], [0], [0], [1], [0, 0, 1, 1], [], []>} : vector<8x36xf32>, vector<36x256xf32>, vector<8x256xf32> -> vector<8x256xf32>
    %41 = vector.broadcast %2 : vector<8x1xf32> to vector<8x256xf32>
    %42 = arith.addf %40, %41 : vector<8x256xf32>
    %cst_29 = arith.constant 2.000000e-01 : f32
    %43 = vector.broadcast %cst_29 : f32 to vector<8x256xf32>
    %44 = arith.mulf %43, %42 : vector<8x256xf32>
    %45 = arith.maximumf %42, %44 : vector<8x256xf32>
    %46 = vector.broadcast %3 : vector<8x1xf32> to vector<8x256xf32>
    %47 = arith.mulf %45, %46 : vector<8x256xf32>
    %cst_30 = arith.constant dense<0.000000e+00> : vector<256xf32>
    %48 = vector.multi_reduction <add>, %47, %cst_30 [0] : vector<8x256xf32> to vector<256xf32>
    %49 = vector.shape_cast %48 : vector<256xf32> to vector<1x256xf32>
    %50 = vector.broadcast %4 : f32 to vector<1x256xf32>
    %51 = arith.addf %49, %50 : vector<1x256xf32>
    %cst_31 = arith.constant 2.000000e-01 : f32
    %52 = vector.broadcast %cst_31 : f32 to vector<1x256xf32>
    %53 = arith.mulf %52, %51 : vector<1x256xf32>
    %54 = arith.maximumf %51, %53 : vector<1x256xf32>
    %55 = tpu.concatenate %37, %54 in 0 : vector<1x256xf32>, vector<1x256xf32> -> vector<2x256xf32>
    %56 = arith.addf %55, %20 : vector<2x256xf32>
    %cst_32 = arith.constant 0.000000e+00 : f32
    %57 = vector.broadcast %cst_32 : f32 to vector<2x256xf32>
    %58 = arith.subf %57, %56 : vector<2x256xf32>
    %59 = math.exp %58 : vector<2x256xf32>
    %cst_33 = arith.constant 1.000000e+00 : f32
    %60 = vector.broadcast %cst_33 : f32 to vector<2x256xf32>
    %61 = arith.addf %60, %59 : vector<2x256xf32>
    %cst_34 = arith.constant 1.000000e+00 : f32
    %62 = vector.broadcast %cst_34 : f32 to vector<2x256xf32>
    %63 = arith.divf %62, %61 : vector<2x256xf32>
    %c0_35 = arith.constant 0 : index
    %c0_36 = arith.constant 0 : index
    %64 = vector.load %arg12[%c0_35, %c0_36] : memref<2x256xf32, #tpu.memory_space<vmem>>, vector<2x256xf32>
    tpu.vector_store %arg12[%c0_35, %c0_36], %63 {strides = array<i32>} : memref<2x256xf32, #tpu.memory_space<vmem>>, vector<2x256xf32>,
    %65 = tpu.concatenate %63, %63, %63, %63 in 1 : vector<2x256xf32>, vector<2x256xf32>, vector<2x256xf32>, vector<2x256xf32> -> vector<2x1024xf32>
    %66 = arith.mulf %0, %65 : vector<2x1024xf32>
    %c0_37 = arith.constant 0 : index
    %c0_38 = arith.constant 0 : index
    %67 = vector.load %arg11[%c0_37, %c0_38] : memref<2x1024xf32, #tpu.memory_space<vmem>>, vector<2x1024xf32>
    tpu.vector_store %arg11[%c0_37, %c0_38], %66 {strides = array<i32>} : memref<2x1024xf32, #tpu.memory_space<vmem>>, vector<2x1024xf32>,
    return
  }
  func.func @transform_0(%arg0: i32) -> i32 {
    %c0_i32 = arith.constant 0 : i32
    %c0_i32_0 = arith.constant 0 : i32
    return %c0_i32 : i32
  }
  func.func @transform_1(%arg0: i32) -> (i32, i32, i32) {
    %c0_i32 = arith.constant 0 : i32
    %c0_i32_0 = arith.constant 0 : i32
    %c0_i32_1 = arith.constant 0 : i32
    return %arg0, %c0_i32, %c0_i32_0 : i32, i32, i32
  }
  func.func @transform_2(%arg0: i32) -> (i32, i32) {
    %c0_i32 = arith.constant 0 : i32
    %c0_i32_0 = arith.constant 0 : i32
    return %arg0, %c0_i32 : i32, i32
  }
  func.func @transform_3(%arg0: i32) -> (i32, i32) {
    %c0_i32 = arith.constant 0 : i32
    %c0_i32_0 = arith.constant 0 : i32
    %c0_i32_1 = arith.constant 0 : i32
    return %c0_i32, %c0_i32_0 : i32, i32
  }
  func.func @transform_4(%arg0: i32) -> (i32, i32) {
    %c0_i32 = arith.constant 0 : i32
    %c0_i32_0 = arith.constant 0 : i32
    %c0_i32_1 = arith.constant 0 : i32
    return %c0_i32, %c0_i32_0 : i32, i32
  }
  func.func @transform_5(%arg0: i32) -> (i32, i32) {
    %c0_i32 = arith.constant 0 : i32
    %c0_i32_0 = arith.constant 0 : i32
    %c0_i32_1 = arith.constant 0 : i32
    return %c0_i32, %c0_i32_0 : i32, i32
  }
  func.func @transform_6(%arg0: i32) -> (i32, i32) {
    %c0_i32 = arith.constant 0 : i32
    %c0_i32_0 = arith.constant 0 : i32
    %c0_i32_1 = arith.constant 0 : i32
    return %c0_i32, %c0_i32_0 : i32, i32
  }
  func.func @transform_7(%arg0: i32) -> (i32, i32) {
    %c0_i32 = arith.constant 0 : i32
    %c0_i32_0 = arith.constant 0 : i32
    %c0_i32_1 = arith.constant 0 : i32
    return %c0_i32, %c0_i32_0 : i32, i32
  }
  func.func @transform_8(%arg0: i32) -> (i32, i32) {
    %c0_i32 = arith.constant 0 : i32
    %c0_i32_0 = arith.constant 0 : i32
    %c0_i32_1 = arith.constant 0 : i32
    return %c0_i32, %c0_i32_0 : i32, i32
  }
  func.func @transform_9(%arg0: i32) -> (i32, i32) {
    %c0_i32 = arith.constant 0 : i32
    %c0_i32_0 = arith.constant 0 : i32
    %c0_i32_1 = arith.constant 0 : i32
    return %c0_i32, %c0_i32_0 : i32, i32
  }
  func.func @transform_10(%arg0: i32) -> (i32, i32) {
    %c0_i32 = arith.constant 0 : i32
    %c0_i32_0 = arith.constant 0 : i32
    return %arg0, %c0_i32 : i32, i32
  }
  func.func @transform_11(%arg0: i32) -> (i32, i32) {
    %c0_i32 = arith.constant 0 : i32
    %c0_i32_0 = arith.constant 0 : i32
    return %arg0, %c0_i32 : i32, i32
  }
}

</mosaic_0001>

<bundles_post_ra>
// kernel: pixel_attention_forward.1
= control target key start
LH: loop header
LB: loop body
LE: loop exit
PB: predicated region body
PF: predicated region fallthrough
CT: control target
= control target key end

     0   :  { %vm440_vm0 = vcmask 1043456   ;;  %vm436_vm1 = vcmask 293888   ;;  %vm373_vm2 = vcmask 261120   ;;  %vm598_vm3 = vcmask 1040384   ;;  %s1282_s6 = inlined_call_operand.vmem [shape: f32[1024,32], index: 6, kind: input, shape index: {}]   ;;  %s1283_s2 = inlined_call_operand.vmem [shape: f32[2,1024], index: 2, kind: input, shape index: {}]   ;;  %s1284_s7 = inlined_call_operand.vmem [shape: f32[1,32], index: 7, kind: input, shape index: {}]   ;;  %s1285_s1 = inlined_call_operand.vmem [shape: f32[2,36,256], index: 1, kind: input, shape index: {}]   ;;  %s1286_s3 = inlined_call_operand.vmem [shape: f32[8,36], index: 3, kind: input, shape index: {}]   ;;  %s1287_s8 = inlined_call_operand.vmem [shape: f32[32,256], index: 8, kind: input, shape index: {}]   ;;  %s1288_s4 = inlined_call_operand.vmem [shape: f32[8,1], index: 4, kind: input, shape index: {}]   ;;  %s1289_s5 = inlined_call_operand.vmem [shape: f32[8,1], index: 5, kind: input, shape index: {}]   ;;  %s1290_s9 = inlined_call_operand.vmem [shape: f32[1,256], index: 9, kind: input, shape index: {}]   ;;  %s1291_s0 = inlined_call_operand.<no memory space> [shape: f32[1], index: 0, kind: input, shape index: {}]   ;;  %s1292_s11 = inlined_call_operand.vmem [shape: f32[2,256], index: 11, kind: output, shape index: {1}]   ;;  %s1293_s10 = inlined_call_operand.vmem [shape: f32[2,1024], index: 10, kind: output, shape index: {0}]  }
   0x1   :  { %v91_v0 = vld [vmem:[%s1282_s6 + $0x178] sm:$0xff]  ;;  %v90_v2 = vld [vmem:[%s1282_s6 + $0x170] sm:$0xff]  ;;  %v89_v6 = vld [vmem:[%s1282_s6 + $0x168] sm:$0xff]  ;;  %vm644_vm12 = vcmask 1041408   ;;  %vm650_vm13 = vcmask 1045508  }
   0x2   :  { %v59_v1 = vld [vmem:[%s1282_s6 + $0x78] sm:$0xff]  ;;  %237 = vmatpush.msra.mxu2 %v91_v0  ;;  %v58_v4 = vld [vmem:[%s1282_s6 + $0x70] sm:$0xff]  ;;  %v57_v8 = vld [vmem:[%s1282_s6 + $0x68] sm:$0xff] }
   0x3   :  { %197 = vmatpush.msra.mxu0 %v59_v1  ;;  %v107_v3 = vld [vmem:[%s1282_s6 + $0x1f8] sm:$0xff]  ;;  %v106_v7 = vld [vmem:[%s1282_s6 + $0x1f0] sm:$0xff]  ;;  %v105_v10 = vld [vmem:[%s1282_s6 + $0x1e8] sm:$0xff] }
   0x4   :  { %v75_v5 = vld [vmem:[%s1282_s6 + $0xf8] sm:$0xff]  ;;  %257 = vmatpush.msra.mxu3 %v107_v3  ;;  %238 = vmatpush.msra.mxu2 %v90_v2  ;;  %v74_v9 = vld [vmem:[%s1282_s6 + $0xf0] sm:$0xff]  ;;  %v88_v11 = vld [vmem:[%s1282_s6 + $0x160] sm:$0xff] }
   0x5   :  { %217 = vmatpush.msra.mxu1 %v75_v5  ;;  %198 = vmatpush.msra.mxu0 %v58_v4  ;;  %v56_v12 = vld [vmem:[%s1282_s6 + $0x60] sm:$0xff]  ;;  %v73_v13 = vld [vmem:[%s1282_s6 + $0xe8] sm:$0xff]  ;;  %v87_v16 = vld [vmem:[%s1282_s6 + $0x158] sm:$0xff] }
   0x6   :  { %258 = vmatpush.msra.mxu3 %v106_v7  ;;  %239 = vmatpush.msra.mxu2 %v89_v6  ;;  %v104_v14 = vld [vmem:[%s1282_s6 + $0x1e0] sm:$0xff]  ;;  %v55_v17 = vld [vmem:[%s1282_s6 + $0x58] sm:$0xff]  ;;  %v86_v20 = vld [vmem:[%s1282_s6 + $0x150] sm:$0xff] }
   0x7   :  { %218 = vmatpush.msra.mxu1 %v74_v9  ;;  %199 = vmatpush.msra.mxu0 %v57_v8  ;;  %v72_v15 = vld [vmem:[%s1282_s6 + $0xe0] sm:$0xff]  ;;  %v103_v18 = vld [vmem:[%s1282_s6 + $0x1d8] sm:$0xff]  ;;  %v54_v21 = vld [vmem:[%s1282_s6 + $0x50] sm:$0xff] }
   0x8   :  { %259 = vmatpush.msra.mxu3 %v105_v10  ;;  %240 = vmatpush.msra.mxu2 %v88_v11  ;;  %v71_v19 = vld [vmem:[%s1282_s6 + $0xd8] sm:$0xff]  ;;  %v102_v22 = vld [vmem:[%s1282_s6 + $0x1d0] sm:$0xff]  ;;  %v85_v24 = vld [vmem:[%s1282_s6 + $0x148] sm:$0xff] }
   0x9   :  { %219 = vmatpush.msra.mxu1 %v73_v13  ;;  %200 = vmatpush.msra.mxu0 %v56_v12  ;;  %v70_v23 = vld [vmem:[%s1282_s6 + $0xd0] sm:$0xff]  ;;  %v53_v25 = vld [vmem:[%s1282_s6 + $0x48] sm:$0xff]  ;;  %v84_v28 = vld [vmem:[%s1282_s6 + $0x140] sm:$0xff] }
   0xa   :  { %260 = vmatpush.msra.mxu3 %v104_v14  ;;  %241 = vmatpush.msra.mxu2 %v87_v16  ;;  %v101_v26 = vld [vmem:[%s1282_s6 + $0x1c8] sm:$0xff]  ;;  %v52_v29 = vld [vmem:[%s1282_s6 + $0x40] sm:$0xff]  ;;  %v83_v32 = vld [vmem:[%s1282_s6 + $0x138] sm:$0xff] }
   0xb   :  { %220 = vmatpush.msra.mxu1 %v72_v15  ;;  %201 = vmatpush.msra.mxu0 %v55_v17  ;;  %v69_v27 = vld [vmem:[%s1282_s6 + $0xc8] sm:$0xff]  ;;  %v100_v30 = vld [vmem:[%s1282_s6 + $0x1c0] sm:$0xff]  ;;  %v51_v33 = vld [vmem:[%s1282_s6 + $0x38] sm:$0xff] }
   0xc   :  { %261 = vmatpush.msra.mxu3 %v103_v18  ;;  %242 = vmatpush.msra.mxu2 %v86_v20  ;;  %v68_v31 = vld [vmem:[%s1282_s6 + $0xc0] sm:$0xff]  ;;  %v99_v34 = vld [vmem:[%s1282_s6 + $0x1b8] sm:$0xff]  ;;  %v82_v36 = vld [vmem:[%s1282_s6 + $0x130] sm:$0xff] }
   0xd   :  { %221 = vmatpush.msra.mxu1 %v71_v19  ;;  %202 = vmatpush.msra.mxu0 %v54_v21  ;;  %v67_v35 = vld [vmem:[%s1282_s6 + $0xb8] sm:$0xff]  ;;  %v50_v37 = vld [vmem:[%s1282_s6 + $0x30] sm:$0xff]  ;;  %v81_v40 = vld [vmem:[%s1282_s6 + $0x128] sm:$0xff] }
   0xe   :  { %262 = vmatpush.msra.mxu3 %v102_v22  ;;  %243 = vmatpush.msra.mxu2 %v85_v24  ;;  %v98_v38 = vld [vmem:[%s1282_s6 + $0x1b0] sm:$0xff]  ;;  %v49_v41 = vld [vmem:[%s1282_s6 + $0x28] sm:$0xff]  ;;  %v80_v44 = vld [vmem:[%s1282_s6 + $0x120] sm:$0xff] }
   0xf   :  { %222 = vmatpush.msra.mxu1 %v70_v23  ;;  %203 = vmatpush.msra.mxu0 %v53_v25  ;;  %v66_v39 = vld [vmem:[%s1282_s6 + $0xb0] sm:$0xff]  ;;  %v97_v42 = vld [vmem:[%s1282_s6 + $0x1a8] sm:$0xff]  ;;  %v48_v45 = vld [vmem:[%s1282_s6 + $0x20] sm:$0xff] }
  0x10   :  { %263 = vmatpush.msra.mxu3 %v101_v26  ;;  %244 = vmatpush.msra.mxu2 %v84_v28  ;;  %v65_v43 = vld [vmem:[%s1282_s6 + $0xa8] sm:$0xff]  ;;  %v96_v46 = vld [vmem:[%s1282_s6 + $0x1a0] sm:$0xff]  ;;  %v79_v48 = vld [vmem:[%s1282_s6 + $0x118] sm:$0xff] }
  0x11   :  { %223 = vmatpush.msra.mxu1 %v69_v27  ;;  %204 = vmatpush.msra.mxu0 %v52_v29  ;;  %v64_v47 = vld [vmem:[%s1282_s6 + $0xa0] sm:$0xff]  ;;  %v47_v49 = vld [vmem:[%s1282_s6 + $0x18] sm:$0xff]  ;;  %v78_v52 = vld [vmem:[%s1282_s6 + $0x110] sm:$0xff] }
  0x12   :  { %264 = vmatpush.msra.mxu3 %v100_v30  ;;  %245 = vmatpush.msra.mxu2 %v83_v32  ;;  %v95_v50 = vld [vmem:[%s1282_s6 + $0x198] sm:$0xff]  ;;  %v46_v53 = vld [vmem:[%s1282_s6 + $0x10] sm:$0xff]  ;;  %v77_v56 = vld [vmem:[%s1282_s6 + $0x108] sm:$0xff] }
  0x13   :  { %224 = vmatpush.msra.mxu1 %v68_v31  ;;  %205 = vmatpush.msra.mxu0 %v51_v33  ;;  %v63_v51 = vld [vmem:[%s1282_s6 + $0x98] sm:$0xff]  ;;  %v94_v54 = vld [vmem:[%s1282_s6 + $0x190] sm:$0xff]  ;;  %v45_v57 = vld [vmem:[%s1282_s6 + $0x8] sm:$0xff] }
  0x14   :  { %265 = vmatpush.msra.mxu3 %v99_v34  ;;  %246 = vmatpush.msra.mxu2 %v82_v36  ;;  %v62_v55 = vld [vmem:[%s1282_s6 + $0x90] sm:$0xff]  ;;  %v93_v58 = vld [vmem:[%s1282_s6 + $0x188] sm:$0xff]  ;;  %v76_v60 = vld [vmem:[%s1282_s6 + $0x100] sm:$0xff] }
  0x15   :  { %225 = vmatpush.msra.mxu1 %v67_v35  ;;  %206 = vmatpush.msra.mxu0 %v50_v37  ;;  %v61_v59 = vld [vmem:[%s1282_s6 + $0x88] sm:$0xff]  ;;  %v44_v61 = vld [vmem:[%s1282_s6] sm:$0xff]  ;;  %v155_v62 = vld [vmem:[%s1282_s6 + $0x378] sm:$0xff] }
  0x16   :  { %266 = vmatpush.msra.mxu3 %v98_v38  ;;  %247 = vmatpush.msra.mxu2 %v81_v40  ;;  %v92_v63 = vld [vmem:[%s1282_s6 + $0x180] sm:$0xff]  ;;  %v123_v0 = vld [vmem:[%s1282_s6 + $0x278] sm:$0xff]  ;;  %v154_v2 = vld [vmem:[%s1282_s6 + $0x370] sm:$0xff] }
  0x17   :  { %226 = vmatpush.msra.mxu1 %v66_v39  ;;  %207 = vmatpush.msra.mxu0 %v49_v41  ;;  %v171_v1 = vld [vmem:[%s1282_s6 + $0x3f8] sm:$0xff]  ;;  %v60_v3 = vld [vmem:[%s1282_s6 + $0x80] sm:$0xff]  ;;  %v122_v4 = vld [vmem:[%s1282_s6 + $0x270] sm:$0xff] }
  0x18   :  { %267 = vmatpush.msra.mxu3 %v97_v42  ;;  %248 = vmatpush.msra.mxu2 %v80_v44  ;;  %v139_v5 = vld [vmem:[%s1282_s6 + $0x2f8] sm:$0xff]  ;;  %v153_v6 = vld [vmem:[%s1282_s6 + $0x368] sm:$0xff]  ;;  %v170_v7 = vld [vmem:[%s1282_s6 + $0x3f0] sm:$0xff] }
  0x19   :  { %227 = vmatpush.msra.mxu1 %v65_v43  ;;  %208 = vmatpush.msra.mxu0 %v48_v45  ;;  %v121_v8 = vld [vmem:[%s1282_s6 + $0x268] sm:$0xff]  ;;  %v138_v9 = vld [vmem:[%s1282_s6 + $0x2f0] sm:$0xff]  ;;  %v152_v10 = vld [vmem:[%s1282_s6 + $0x360] sm:$0xff] }
  0x1a   :  { %268 = vmatpush.msra.mxu3 %v96_v46  ;;  %249 = vmatpush.msra.mxu2 %v79_v48  ;;  %v169_v11 = vld [vmem:[%s1282_s6 + $0x3e8] sm:$0xff]  ;;  %v120_v12 = vld [vmem:[%s1282_s6 + $0x260] sm:$0xff]  ;;  %v151_v15 = vld [vmem:[%s1282_s6 + $0x358] sm:$0xff] }
  0x1b   :  { %228 = vmatpush.msra.mxu1 %v64_v47  ;;  %209 = vmatpush.msra.mxu0 %v47_v49  ;;  %v137_v13 = vld [vmem:[%s1282_s6 + $0x2e8] sm:$0xff]  ;;  %v995_v14 = vld [vmem:[%s1283_s2] sm:$0xff]  ;;  %v119_v17 = vld [vmem:[%s1282_s6 + $0x258] sm:$0xff] }
  0x1c   :  { %269 = vmatpush.msra.mxu3 %v95_v50  ;;  %250 = vmatpush.msra.mxu2 %v78_v52  ;;  %v168_v16 = vld [vmem:[%s1282_s6 + $0x3e0] sm:$0xff]  ;;  %178 = vst [vmem:[#allocation1] ss:$4 sm:$0xff] %v995_v14  ;;  %v150_v19 = vld [vmem:[%s1282_s6 + $0x350] sm:$0xff]  ;;  %v167_v20 = vld [vmem:[%s1282_s6 + $0x3d8] sm:$0xff] }
  0x1d   :  { %229 = vmatpush.msra.mxu1 %v63_v51  ;;  %210 = vmatpush.msra.mxu0 %v46_v53  ;;  %v136_v18 = vld [vmem:[%s1282_s6 + $0x2e0] sm:$0xff]  ;;  %v118_v21 = vld [vmem:[%s1282_s6 + $0x250] sm:$0xff]  ;;  %v135_v22 = vld [vmem:[%s1282_s6 + $0x2d8] sm:$0xff] }
  0x1e   :  { %270 = vmatpush.msra.mxu3 %v94_v54  ;;  %251 = vmatpush.msra.mxu2 %v77_v56  ;;  %v149_v23 = vld [vmem:[%s1282_s6 + $0x348] sm:$0xff]  ;;  %v166_v24 = vld [vmem:[%s1282_s6 + $0x3d0] sm:$0xff]  ;;  %v148_v28 = vld [vmem:[%s1282_s6 + $0x340] sm:$0xff] }
  0x1f   :  { %230 = vmatpush.msra.mxu1 %v62_v55  ;;  %211 = vmatpush.msra.mxu0 %v45_v57  ;;  %v1031_v25 = vld [vmem:[%s1283_s2 + $0x8] sm:$0xff]  ;;  %v134_v27 = vld [vmem:[%s1282_s6 + $0x2d0] sm:$0xff]  ;;  %v116_v30 = vld [vmem:[%s1282_s6 + $0x240] sm:$0xff] }
  0x20   :  { %271 = vmatpush.msra.mxu3 %v93_v58  ;;  %252 = vmatpush.msra.mxu2 %v76_v60  ;;  %v117_v26 = vld [vmem:[%s1282_s6 + $0x248] sm:$0xff]  ;;  %180 = vst [vmem:[#allocation1 + $0x20] ss:$4 sm:$0xff] %v1031_v25  ;;  %v147_v32 = vld [vmem:[%s1282_s6 + $0x338] sm:$0xff]  ;;  %v164_v33 = vld [vmem:[%s1282_s6 + $0x3c0] sm:$0xff] }
  0x21   :  { %231 = vmatpush.msra.mxu1 %v61_v59  ;;  %212 = vmatpush.msra.mxu0 %v44_v61  ;;  %v165_v29 = vld [vmem:[%s1282_s6 + $0x3c8] sm:$0xff]  ;;  %v115_v34 = vld [vmem:[%s1282_s6 + $0x238] sm:$0xff]  ;;  %v132_v35 = vld [vmem:[%s1282_s6 + $0x2c0] sm:$0xff] }
  0x22   :  { %317 = vmatpush.msrb.mxu2 %v155_v62  ;;  %272 = vmatpush.msra.mxu3 %v92_v63  ;;  %v133_v31 = vld [vmem:[%s1282_s6 + $0x2c8] sm:$0xff]  ;;  %v146_v36 = vld [vmem:[%s1282_s6 + $0x330] sm:$0xff]  ;;  %v163_v37 = vld [vmem:[%s1282_s6 + $0x3b8] sm:$0xff] }
  0x23   :  { %277 = vmatpush.msrb.mxu0 %v123_v0  ;;  %232 = vmatpush.msra.mxu1 %v60_v3  ;;  %v114_v38 = vld [vmem:[%s1282_s6 + $0x230] sm:$0xff]  ;;  %v131_v39 = vld [vmem:[%s1282_s6 + $0x2b8] sm:$0xff]  ;;  %v145_v40 = vld [vmem:[%s1282_s6 + $0x328] sm:$0xff] }
  0x24   :  { %337 = vmatpush.msrb.mxu3 %v171_v1  ;;  %318 = vmatpush.msrb.mxu2 %v154_v2  ;;  %v162_v41 = vld [vmem:[%s1282_s6 + $0x3b0] sm:$0xff]  ;;  %v113_v42 = vld [vmem:[%s1282_s6 + $0x228] sm:$0xff]  ;;  %v144_v44 = vld [vmem:[%s1282_s6 + $0x320] sm:$0xff] }
  0x25   :  { %278 = vmatpush.msrb.mxu0 %v122_v4  ;;  %297 = vmatpush.msrb.mxu1 %v139_v5  ;;  %v130_v43 = vld [vmem:[%s1282_s6 + $0x2b0] sm:$0xff]  ;;  %v161_v45 = vld [vmem:[%s1282_s6 + $0x3a8] sm:$0xff]  ;;  %v112_v47 = vld [vmem:[%s1282_s6 + $0x220] sm:$0xff] }
  0x26   :  { %319 = vmatpush.msrb.mxu2 %v153_v6  ;;  %338 = vmatpush.msrb.mxu3 %v170_v7  ;;  %v183_v46 = vld.sshfl [vmem:[#allocation1 + $0x10] sm:$0xff pattern:$0x73625140]  ;;  %v129_v48 = vld [vmem:[%s1282_s6 + $0x2a8] sm:$0xff]  ;;  %v143_v49 = vld [vmem:[%s1282_s6 + $0x318] sm:$0xff] }
  0x27   :  { %279 = vmatpush.msrb.mxu0 %v121_v8  ;;  %298 = vmatpush.msrb.mxu1 %v138_v9  ;;  %v160_v50 = vld [vmem:[%s1282_s6 + $0x3a0] sm:$0xff]  ;;  %v184_v52 = vld.sshfl [vmem:[#allocation1 + $0x18] sm:$0xff pattern:$0x73625140]  ;;  %v142_v55 = vld [vmem:[%s1282_s6 + $0x310] sm:$0xff] }
  0x28   :  { %320 = vmatpush.msrb.mxu2 %v152_v10  ;;  %339 = vmatpush.msrb.mxu3 %v169_v11  ;;  %v181_v51 = vld.sshfl [vmem:[#allocation1] sm:$0xff pattern:$0x73625140]  ;;  %v111_v53 = vld [vmem:[%s1282_s6 + $0x218] sm:$0xff]  ;;  %v110_v58 = vld [vmem:[%s1282_s6 + $0x210] sm:$0xff] }
  0x29   :  { %280 = vmatpush.msrb.mxu0 %v120_v12  ;;  %299 = vmatpush.msrb.mxu1 %v137_v13  ;;  %v128_v54 = vld [vmem:[%s1282_s6 + $0x2a0] sm:$0xff]  ;;  %v159_v56 = vld [vmem:[%s1282_s6 + $0x398] sm:$0xff]  ;;  %v182_v57 = vld.sshfl [vmem:[#allocation1 + $0x8] sm:$0xff pattern:$0x73625140] }
  0x2a   :  { %321 = vmatpush.msrb.mxu2 %v151_v15  ;;  %340 = vmatpush.msrb.mxu3 %v168_v16  ;;  %v127_v59 = vld [vmem:[%s1282_s6 + $0x298] sm:$0xff]  ;;  %v141_v60 = vld [vmem:[%s1282_s6 + $0x308] sm:$0xff]  ;;  %v158_v61 = vld [vmem:[%s1282_s6 + $0x390] sm:$0xff] }
  0x2b   :  { %281 = vmatpush.msrb.mxu0 %v119_v17  ;;  %300 = vmatpush.msrb.mxu1 %v136_v18  ;;  %v109_v62 = vld [vmem:[%s1282_s6 + $0x208] sm:$0xff]  ;;  %v126_v63 = vld [vmem:[%s1282_s6 + $0x290] sm:$0xff]  ;;  %v140_v0 = vld [vmem:[%s1282_s6 + $0x300] sm:$0xff] }
  0x2c   :  { %322 = vmatpush.msrb.mxu2 %v150_v19  ;;  %341 = vmatpush.msrb.mxu3 %v167_v20  ;;  %v157_v1 = vld [vmem:[%s1282_s6 + $0x388] sm:$0xff]  ;;  %v187_v2 = vld.sshfl [vmem:[#allocation1 + $0x30] sm:$0xff pattern:$0x73625140]  ;;  %v108_v3 = vld [vmem:[%s1282_s6 + $0x200] sm:$0xff] }
  0x2d   :  { %282 = vmatpush.msrb.mxu0 %v118_v21  ;;  %301 = vmatpush.msrb.mxu1 %v135_v22  ;;  %v125_v4 = vld [vmem:[%s1282_s6 + $0x288] sm:$0xff]  ;;  %v156_v5 = vld [vmem:[%s1282_s6 + $0x380] sm:$0xff]  ;;  %v188_v7 = vld.sshfl [vmem:[#allocation1 + $0x38] sm:$0xff pattern:$0x73625140] }
  0x2e   :  { %323 = vmatpush.msrb.mxu2 %v149_v23  ;;  %342 = vmatpush.msrb.mxu3 %v166_v24  ;;  %v185_v6 = vld.sshfl [vmem:[#allocation1 + $0x20] sm:$0xff pattern:$0x73625140]  ;;  %v186_v10 = vld.sshfl [vmem:[#allocation1 + $0x28] sm:$0xff pattern:$0x73625140] }
  0x2f   :  { %283 = vmatpush.msrb.mxu0 %v117_v26  ;;  %302 = vmatpush.msrb.mxu1 %v134_v27  ;;  %v124_v8 = vld [vmem:[%s1282_s6 + $0x280] sm:$0xff]  ;;  %v430_v11 = vld [vmem:[%s1285_s1 + $0x48] sm:$0xf]  ;;  %v427_v12 = vld [vmem:[%s1285_s1 + $0x30] sm:$0xff] }
  0x30   :  { %324 = vmatpush.msrb.mxu2 %v148_v28  ;;  %343 = vmatpush.msrb.mxu3 %v165_v29  ;;  %v429_v9 = vld [vmem:[%s1285_s1 + $0x40] sm:$0xf]  ;;  %v428_v13 = vld [vmem:[%s1285_s1 + $0x38] sm:$0xff]  ;;  %v426_v16 = vld [vmem:[%s1285_s1 + $0x28] sm:$0xff] }
  0x31   :  { %284 = vmatpush.msrb.mxu0 %v116_v30  ;;  %303 = vmatpush.msrb.mxu1 %v133_v31  ;;  %v425_v15 = vld [vmem:[%s1285_s1 + $0x20] sm:$0xff]  ;;  %v423_v17 = vld [vmem:[%s1285_s1 + $0x10] sm:$0xff]  ;;  %v424_v18 = vld [vmem:[%s1285_s1 + $0x18] sm:$0xff] }
  0x32   :  { %325 = vmatpush.msrb.mxu2 %v147_v32  ;;  %344 = vmatpush.msrb.mxu3 %v164_v33  ;;  %v421_v19 = vld [vmem:[%s1285_s1] sm:$0xff]  ;;  %v422_v20 = vld [vmem:[%s1285_s1 + $0x8] sm:$0xff]  ;;  %v365_v22 = vld [vmem:[%s1287_s8 + $0x30] sm:$0xff]  ;;  %v697_v33 = vmov 0  }
  0x33   :  { %285 = vmatpush.msrb.mxu0 %v115_v34  ;;  %304 = vmatpush.msrb.mxu1 %v132_v35  ;;  %v1189_v21 = vld [vmem:[%s1286_s3] sm:$0xff]  ;;  %v366_v23 = vld [vmem:[%s1287_s8 + $0x38] sm:$0xff]  ;;  %v364_v26 = vld [vmem:[%s1287_s8 + $0x28] sm:$0xff] }
  0x34   :  { %326 = vmatpush.msrb.mxu2 %v146_v36  ;;  %345 = vmatpush.msrb.mxu3 %v163_v37  ;;  %v363_v24 = vld [vmem:[%s1287_s8 + $0x20] sm:$0xff]  ;;  %v361_v27 = vld [vmem:[%s1287_s8 + $0x10] sm:$0xff]  ;;  %v362_v28 = vld [vmem:[%s1287_s8 + $0x18] sm:$0xff] }
  0x35   :  { %286 = vmatpush.msrb.mxu0 %v114_v38  ;;  %305 = vmatpush.msrb.mxu1 %v131_v39  ;;  %v359_v29 = vld [vmem:[%s1287_s8] sm:$0xff]  ;;  %v360_v30 = vld [vmem:[%s1287_s8 + $0x8] sm:$0xff]  ;;  %v680_v31 = vld [vmem:[%s1285_s1 + $0x90] sm:$0xf] }
  0x36   :  { %327 = vmatpush.msrb.mxu2 %v145_v40  ;;  %346 = vmatpush.msrb.mxu3 %v162_v41  ;;  %v681_v32 = vld [vmem:[%s1285_s1 + $0x98] sm:$0xf]  ;;  %v41_v34 = vld [vmem:[%s1288_s4] sm:$0xff]  ;;  %v679_v36 = vld [vmem:[%s1285_s1 + $0x88] sm:$0xff] }
  0x37   :  { %287 = vmatpush.msrb.mxu0 %v113_v42  ;;  %306 = vmatpush.msrb.mxu1 %v130_v43  ;;  %v678_v35 = vld [vmem:[%s1285_s1 + $0x80] sm:$0xff]  ;;  %v676_v37 = vld [vmem:[%s1285_s1 + $0x70] sm:$0xff]  ;;  %v677_v38 = vld [vmem:[%s1285_s1 + $0x78] sm:$0xff] }
  0x38   :  { %328 = vmatpush.msrb.mxu2 %v144_v44  ;;  %347 = vmatpush.msrb.mxu3 %v161_v45  ;;  %v674_v39 = vld [vmem:[%s1285_s1 + $0x60] sm:$0xff]  ;;  %v675_v40 = vld [vmem:[%s1285_s1 + $0x68] sm:$0xff]  ;;  %v672_v41 = vld [vmem:[%s1285_s1 + $0x50] sm:$0xff] }
  0x39   :  { %253 = vmatmul.f32.vlgmr.msra.gmra.mxu2 %v183_v46  ;;  %288 = vmatpush.msrb.mxu0 %v112_v47  ;;  %v673_v42 = vld [vmem:[%s1285_s1 + $0x58] sm:$0xff]  ;;  %v688_v43 = vld [vmem:[%s1284_s7] ss:$0 sm:$0xff] }
  0x3a   :  { %307 = vmatpush.msrb.mxu1 %v129_v48  ;;  %329 = vmatpush.msrb.mxu2 %v143_v49  ;;  %v42_v44 = vld [vmem:[%s1289_s5] sm:$0xff] }
  0x3b   :  { %348 = vmatpush.msrb.mxu3 %v160_v50  ;;  %213 = vmatmul.f32.vlgmr.msra.gmra.mxu0 %v181_v51 }
  0x3c   :  { %273 = vmatmul.f32.vlgmr.msra.gmra.mxu3 %v184_v52  ;;  %289 = vmatpush.msrb.mxu0 %v111_v53 }
  0x3d   :  { %308 = vmatpush.msrb.mxu1 %v128_v54  ;;  %330 = vmatpush.msrb.mxu2 %v142_v55 }
  0x3e   :  { %349 = vmatpush.msrb.mxu3 %v159_v56  ;;  %233 = vmatmul.f32.vlgmr.msra.gmra.mxu1 %v182_v57 }
  0x3f   :  { %290 = vmatpush.msrb.mxu0 %v110_v58  ;;  %309 = vmatpush.msrb.mxu1 %v127_v59 }
  0x40   :  { %331 = vmatpush.msrb.mxu2 %v141_v60  ;;  %350 = vmatpush.msrb.mxu3 %v158_v61 }
  0x41   :  { %291 = vmatpush.msrb.mxu0 %v109_v62  ;;  %310 = vmatpush.msrb.mxu1 %v126_v63 }
  0x42   :  { %332 = vmatpush.msrb.mxu2 %v140_v0  ;;  %351 = vmatpush.msrb.mxu3 %v157_v1 }
  0x43   :  { %333 = vmatmul.f32.vlgmr.msrb.gmra.mxu2 %v187_v2  ;;  %292 = vmatpush.msrb.mxu0 %v108_v3 }
  0x44   :  { %311 = vmatpush.msrb.mxu1 %v125_v4  ;;  %352 = vmatpush.msrb.mxu3 %v156_v5 }
  0x45   :  { %293 = vmatmul.f32.vlgmr.msrb.gmra.mxu0 %v185_v6  ;;  %353 = vmatmul.f32.vlgmr.msrb.gmra.mxu3 %v188_v7 }
  0x46   :  { %312 = vmatpush.msrb.mxu1 %v124_v8  ;;  %668 = vmatpush.msk.msra.mxu2 %vm440_vm0, %v429_v9 }
  0x47   :  { %313 = vmatmul.f32.vlgmr.msrb.gmra.mxu1 %v186_v10  ;;  %670 = vmatpush.msk.msra.mxu3 %vm440_vm0, %v430_v11 }
  0x48   :  { %459 = vmatpush.msra.mxu2 %v427_v12  ;;  %389 = vmatpush.msra.mxu0 %v365_v22 }
  0x49   :  { %479 = vmatpush.msra.mxu3 %v428_v13  ;;  %409 = vmatpush.msra.mxu1 %v366_v23 }
  0x4a   :  { %460 = vmatpush.msra.mxu2 %v425_v15  ;;  %390 = vmatpush.msra.mxu0 %v363_v24 }
  0x4b   :  { %480 = vmatpush.msra.mxu3 %v426_v16  ;;  %410 = vmatpush.msra.mxu1 %v364_v26 }
  0x4c   :  { %461 = vmatpush.msra.mxu2 %v423_v17  ;;  %391 = vmatpush.msra.mxu0 %v361_v27 }
  0x4d   :  { %481 = vmatpush.msra.mxu3 %v424_v18  ;;  %411 = vmatpush.msra.mxu1 %v362_v28 }
  0x4e   :  { %462 = vmatpush.msra.mxu2 %v421_v19  ;;  %392 = vmatpush.msra.mxu0 %v359_v29 }
  0x4f   :  { %482 = vmatpush.msra.mxu3 %v422_v20  ;;  %669 = vmatmul.msk.f32.vlgmr.msra.gmra.mxu2 %vm436_vm1, %v1189_v21 }
  0x50   :  { %671 = vmatmul.msk.f32.vlgmr.msra.gmra.mxu3 %vm436_vm1, %v1189_v21  ;;  %412 = vmatpush.msra.mxu1 %v360_v30 }
  0x51   :  { %682 = vmatpush.msk.msrb.mxu0 %vm440_vm0, %v680_v31  ;;  %687 = vset.pattern.permute.xlu0 %v697_v33 }
  0x52   :  { %684 = vmatpush.msk.msrb.mxu1 %vm440_vm0, %v681_v32  ;;  %433 = vperm.xlu0 %687, %v41_v34  }
  0x53   :  { %546 = vmatpush.msrb.mxu0 %v678_v35 }
  0x54   :  { %566 = vmatpush.msrb.mxu1 %v679_v36 }
  0x55   :  { %547 = vmatpush.msrb.mxu0 %v676_v37  ;;  %v367_v37 = vld [vmem:[%s1290_s9] sm:$0x3] }
  0x56   :  { %567 = vmatpush.msrb.mxu1 %v677_v38 }
  0x57   :  { %548 = vmatpush.msrb.mxu0 %v674_v39 }
  0x58   :  { %568 = vmatpush.msrb.mxu1 %v675_v40 }
  0x59   :  { %549 = vmatpush.msrb.mxu0 %v672_v41 }
  0x5a   :  { %569 = vmatpush.msrb.mxu1 %v673_v42  ;;  %493 = vperm.xlu0 %687, %v42_v44   ;;  %v510_v44 = vstv %s1291_s0 }
  0xb8   :  { %v214_v45 = vpop.f32.mrf.mxu0 }
  0xb9   :  { %v215_v46 = vadd.f32 %v688_v43, %v214_v45  ;;  %v369_v45 = vperm.slane %v367_v37, 0 }
  0xbb   :  { %v234_v47 = vpop.f32.mrf.mxu1 }
  0xbc   :  { %v235_v48 = vadd.f32 %v234_v47, %v215_v46  ;;  %v254_v49 = vpop.f32.mrf.mxu2  ;;  %v370_v46 = vperm.slane %v367_v37, 1 }
  0xbe   :  { %v255_v50 = vadd.f32 %v254_v49, %v235_v48 }
  0xbf   :  { %v274_v51 = vpop.f32.mrf.mxu3 }
  0xc0   :  { %v275_v52 = vadd.f32 %v274_v51, %v255_v50 }
  0xc2   :  { %v294_v53 = vpop.f32.mrf.mxu0 }
  0xc3   :  { %v295_v54 = vadd.f32 %v294_v53, %v275_v52 }
  0xc4   :  { %v314_v55 = vpop.f32.mrf.mxu1  ;;  %v434_v1 = vpop.permute.xlu0 %433 }
  0xc5   :  { %v315_v56 = vadd.f32 %v314_v55, %v295_v54 }
  0xc6   :  { %v334_v57 = vpop.f32.mrf.mxu2 }
  0xc7   :  { %v335_v58 = vadd.f32 %v334_v57, %v315_v56 }
  0xc8   :  { %v354_v59 = vpop.f32.mrf.mxu3 }
  0xc9   :  { %v355_v60 = vadd.f32 %v354_v59, %v335_v58 }
  0xcb   :  { %v357_v61 = vmul.f32 0.2, %v355_v60 }
  0xcc   :  { %v494_v8 = vpop.permute.xlu0 %493 }
  0xcd   :  { %v358_v62 = vmax.f32 %v355_v60, %v357_v61 }
  0xcf   :  { %666 = vmatmul.msk.f32.vlgmr.msra.gmra.mxu0 %vm373_vm2, %v358_v62  ;;  %667 = vmatmul.msk.f32.vlgmr.msra.gmra.mxu1 %vm373_vm2, %v358_v62 }
  0xd2   :  { %v464_v63 = vpop.f32.mrf.mxu2 }
  0xd3   :  { %v484_v0 = vpop.f32.mrf.mxu3  ;;  %v465_v2 = vadd.f32 %v464_v63, %v434_v1 }
  0xd4   :  { %v485_v3 = vadd.f32 %v484_v0, %v434_v1 }
  0xd5   :  { %v487_v4 = vmul.f32 0.2, %v465_v2 }
  0xd6   :  { %v488_v5 = vmul.f32 0.2, %v485_v3 }
  0xd7   :  { %683 = vmatmul.msk.f32.vlgmr.msrb.gmra.mxu0 %vm436_vm1, %v1189_v21  ;;  %685 = vmatmul.msk.f32.vlgmr.msrb.gmra.mxu1 %vm436_vm1, %v1189_v21  ;;  %v489_v6 = vmax.f32 %v465_v2, %v487_v4 }
  0xd8   :  { %v490_v7 = vmax.f32 %v485_v3, %v488_v5 }
  0xd9   :  { %v496_v9 = vmul.f32 %v494_v8, %v489_v6 }
  0xda   :  { %v497_v10 = vmul.f32 %v494_v8, %v490_v7 }
  0xdb   :  { %v498_v13 = vrot.slane %v496_v9, 4 }
  0xdc   :  { %v504_v15 = vrot.slane %v497_v10, 4 }
  0xdd   :  { %v499_v16 = vadd.f32 %v498_v13, %v496_v9 }
  0xde   :  { %v505_v17 = vadd.f32 %v504_v15, %v497_v10 }
  0xdf   :  { %v500_v20 = vrot.slane %v499_v16, 2 }
  0xe0   :  { %v506_v21 = vrot.slane %v505_v17, 2 }
  0xe1   :  { %v501_v27 = vadd.f32 %v500_v20, %v499_v16 }
  0xe2   :  { %v507_v28 = vadd.f32 %v506_v21, %v505_v17 }
  0xe3   :  { %v502_v33 = vrot.slane %v501_v27, 1 }
  0xe4   :  { %v508_v34 = vrot.slane %v507_v28, 1 }
  0xe5   :  { %v503_v40 = vadd.f32 %v502_v33, %v501_v27 }
  0xe6   :  { %v509_v41 = vadd.f32 %v508_v34, %v507_v28 }
  0xe7   :  { %v511_v49 = vadd.f32 %v510_v44, %v503_v40 }
  0xe8   :  { %v512_v50 = vadd.f32 %v510_v44, %v509_v41 }
  0xe9   :  { %v513_v57 = vmul.f32 0.2, %v511_v49 }
  0xea   :  { %v514_v58 = vmul.f32 0.2, %v512_v50 }
  0xec   :  { %v516_v2 = vmax.f32 %v512_v50, %v514_v58 }
 0x14c   :  { %v394_v11 = vpop.f32.mrf.mxu0  ;;  %v414_v12 = vpop.f32.mrf.mxu1 }
 0x14d   :  { %v395_v53 = vadd.f32 %v394_v11, %v369_v45  ;;  %v415_v54 = vadd.f32 %v414_v12, %v370_v46 }
 0x14f   :  { %v417_v61 = vmul.f32 0.2, %v395_v53  ;;  %v418_v62 = vmul.f32 0.2, %v415_v54 }
 0x151   :  { %v419_v5 = vmax.f32 %v395_v53, %v417_v61  ;;  %v420_v6 = vmax.f32 %v415_v54, %v418_v62 }
 0x154   :  { %v551_v18 = vpop.f32.mrf.mxu0  ;;  %v571_v19 = vpop.f32.mrf.mxu1 }
 0x155   :  { %v552_v22 = vadd.f32 %v551_v18, %v434_v1  ;;  %v572_v23 = vadd.f32 %v571_v19, %v434_v1  ;;  %v515_v1 = vmax.f32 %v511_v49, %v513_v57 }
 0x157   :  { %v574_v24 = vmul.f32 0.2, %v552_v22  ;;  %v575_v26 = vmul.f32 0.2, %v572_v23 }
 0x159   :  { %v576_v29 = vmax.f32 %v552_v22, %v574_v24  ;;  %v577_v30 = vmax.f32 %v572_v23, %v575_v26 }
 0x15b   :  { %v578_v31 = vmul.f32 %v576_v29, %v494_v8  ;;  %v579_v32 = vmul.f32 %v577_v30, %v494_v8 }
 0x15d   :  { %v580_v35 = vrot.slane %v578_v31, 4  ;;  %v586_v36 = vrot.slane %v579_v32, 4 }
 0x15f   :  { %v581_v38 = vadd.f32 %v580_v35, %v578_v31  ;;  %v587_v39 = vadd.f32 %v586_v36, %v579_v32 }
 0x161   :  { %v582_v42 = vrot.slane %v581_v38, 2  ;;  %v588_v43 = vrot.slane %v587_v39, 2 }
 0x163   :  { %v583_v47 = vadd.f32 %v582_v42, %v581_v38  ;;  %v589_v48 = vadd.f32 %v588_v43, %v587_v39 }
 0x165   :  { %v584_v51 = vrot.slane %v583_v47, 1  ;;  %v590_v52 = vrot.slane %v589_v48, 1 }
 0x167   :  { %v585_v55 = vadd.f32 %v584_v51, %v583_v47  ;;  %v591_v56 = vadd.f32 %v590_v52, %v589_v48 }
 0x169   :  { %v592_v59 = vadd.f32 %v585_v55, %v510_v44  ;;  %v593_v60 = vadd.f32 %v591_v56, %v510_v44 }
 0x16b   :  { %v594_v63 = vmul.f32 0.2, %v592_v59  ;;  %v595_v0 = vmul.f32 0.2, %v593_v60 }
 0x16d   :  { %v596_v3 = vmax.f32 %v592_v59, %v594_v63  ;;  %v597_v4 = vmax.f32 %v593_v60, %v595_v0 }
 0x16f   :  { %v599_v7 = vsel %vm598_vm3, %v515_v1, %v596_v3  ;;  %v600_v8 = vsel %vm598_vm3, %v516_v2, %v597_v4 }
 0x170   :  { %v601_v9 = vadd.f32 %v599_v7, %v419_v5  ;;  %v602_v10 = vadd.f32 %v600_v8, %v420_v6 }
 0x172   :  { %v603_v11 = vsub.f32 0.0, %v601_v9  ;;  %v604_v12 = vsub.f32 0.0, %v602_v10 }
 0x174   :  { %v605_v13 = vmul.f32 1.442695, %v603_v11  ;;  %v607_v15 = vmul.f32 1.442695, %v604_v12 }
 0x176   :  { %689 = vpow2.f32 %v605_v13 }
 0x177   :  { %691 = vpow2.f32 %v607_v15 }
 0x17c   :  { %v690_v16 = vpop.eup %689 }
 0x17d   :  { %v692_v17 = vpop.eup %691  ;;  %v609_v18 = vadd.f32 1.0, %v690_v16 }
 0x17e   :  { %v610_v19 = vadd.f32 1.0, %v692_v17 }
 0x17f   :  { %693 = vrcp.f32 %v609_v18  ;;  %v622_v26 = vand.u32 2147483648, %v609_v18  ;;  %v620_v29 = vand.u32 2147483647, %v609_v18  ;;  %vm616_vm6 = vweird.f32 %v609_v18 }
 0x180   :  { %695 = vrcp.f32 %v610_v19  ;;  %v637_v30 = vand.u32 2147483648, %v610_v19  ;;  %v635_v32 = vand.u32 2147483647, %v610_v19  ;;  %vm631_vm8 = vweird.f32 %v610_v19 }
 0x181   :  { %v623_v34 = vor.u32 1.1754944e-38, %v622_v26  ;;  %vm621_vm9 = vcmp.eq.f32.partialorder %v620_v29, 8.507059e+37 }
 0x182   :  { %v638_v37 = vor.u32 1.1754944e-38, %v637_v30  ;;  %vm636_vm11 = vcmp.eq.f32.partialorder %v635_v32, 8.507059e+37 }
 0x185   :  { %v694_v20 = vpop.eup %693 }
 0x186   :  { %v696_v21 = vpop.eup %695  ;;  %v612_v22 = vmul.f32 %v694_v20, %v609_v18  ;;  %vm617_vm4 = vweird.f32 %v694_v20 }
 0x187   :  { %v627_v23 = vmul.f32 %v696_v21, %v610_v19  ;;  %vm632_vm5 = vweird.f32 %v696_v21  ;;  %vm618_vm7 = vmor %vm616_vm6, %vm617_vm4 }
 0x188   :  { %v613_v24 = vsub.f32 1.0, %v612_v22  ;;  %vm633_vm10 = vmor %vm631_vm8, %vm632_vm5 }
 0x189   :  { %v628_v27 = vsub.f32 1.0, %v627_v23 }
 0x18a   :  { %v614_v28 = vmul.f32 %v694_v20, %v613_v24 }
 0x18b   :  { %v629_v31 = vmul.f32 %v696_v21, %v628_v27 }
 0x18c   :  { %v615_v33 = vadd.f32 %v694_v20, %v614_v28 }
 0x18d   :  { %v630_v35 = vadd.f32 %v696_v21, %v629_v31 }
 0x18e   :  { %v619_v36 = vsel %vm618_vm7, %v694_v20, %v615_v33 }
 0x18f   :  { %v624_v38 = vsel %vm621_vm9, %v623_v34, %v619_v36  ;;  %v634_v39 = vsel %vm633_vm10, %v696_v21, %v630_v35 }
 0x190   :  { %v648_v40 = vrot.slane %v624_v38, 4  ;;  %v639_v41 = vsel %vm636_vm11, %v638_v37, %v634_v39 }
 0x191   :  { %v643_v42 = vrot.slane %v639_v41, 6  ;;  %v649_v43 = vrot.slane %v639_v41, 2 }
 0x193   :  { %v645_v44 = vsel %vm644_vm12, %v624_v38, %v643_v42  ;;  %v651_v45 = vsel %vm650_vm13, %v648_v40, %v649_v43 }
 0x194   :  { %647 = vst [vmem:[%s1292_s11] sm:$0xf] %v645_v44  ;;  %v652_v46 = vsel %vm440_vm0, %v645_v44, %v651_v45 }
 0x195   :  { %v654_v47 = vmul.f32 %v652_v46, %v995_v14  ;;  %v655_v48 = vmul.f32 %v652_v46, %v1031_v25 }
 0x197   :  { %656 = vst [vmem:[%s1293_s10] sm:$0xff] %v654_v47 }
 0x198   :  { %657 = vst [vmem:[%s1293_s10 + $0x8] sm:$0xff] %v655_v48 }

</bundles_post_ra>
